<compile_context>
chip_gen: v5e
topology: v5e:2x2
jax: 0.10.0
libtpu: 0.0.40
codegen_flags: <defaults>
</compile_context>

<pallas_src>
import functools
import math

import jax
import jax.numpy as jnp
from jax import lax
from jax.experimental import pallas as pl
from jax.experimental.pallas import tpu as pltpu

_E = math.e


def _lambertw_w0(z, n_iters=3, approx_recip=False):
    """Principal-branch Lambert W for z >= -1/e, elementwise float32.

    3-region initial guess (branch-point series / Taylor / Winitzki,
    max abs error ~0.03) + `n_iters` Halley steps (cubic convergence).
    `approx_recip=True` uses the EUP approximate reciprocal (kernel only).
    """
    z = z.astype(jnp.float32)

    def recip(x):
        if approx_recip:
            return pl.reciprocal(x, approx=True)
        return 1.0 / x

    # --- initial guess ---
    p2 = jnp.maximum(2.0 * (_E * z + 1.0), 0.0)            # 2*(e*z + 1) >= 0
    p = jnp.sqrt(p2)
    w_branch = -1.0 + p - p2 * (1.0 / 3.0) + (11.0 / 72.0) * p * p2
    w_taylor = z * (1.0 + z * (-1.0 + 1.5 * z))            # z - z^2 + 1.5 z^3
    l1 = jnp.log(1.0 + z)                                  # 1+z >= 1-1/e > 0
    w_winitzki = l1 * (1.0 - jnp.log(1.0 + l1) * recip(2.0 + l1))
    w = jnp.where(z < -0.25, w_branch,
        jnp.where(z < 0.25, w_taylor, w_winitzki))

    # --- Halley iterations, one reciprocal per step:
    #     w <- w - f*(2w+2) / (e^w*(w+1)*(2w+2) - (w+2)*f),  f = w*e^w - z
    for _ in range(n_iters):
        ew = jnp.exp(w)
        f = w * ew - z
        wp1 = w + 1.0
        d2 = 2.0 * wp1
        num = f * d2
        den = ew * wp1 * d2 - (w + 2.0) * f
        den = jnp.where(den == 0.0, 1.0, den)  # branch point: num == 0 there too
        w = w - num * recip(den)

    # Principal branch is >= -1 for z >= -1/e; clamp f32 undershoot.
    return jnp.maximum(w, -1.0)


def _superloss_kernel(logits_ref, targets_ref, o_ref, *, tau, inv_lam, lam,
                      n_valid, samples_per_tile, steps_per_part, n_iters):
    p = pl.program_id(0)     # "parallel" partial-sum axis (2 TCs on v7x)
    s = pl.program_id(1)     # "arbitrary" reduction axis over sample tiles

    @pl.when(s == 0)
    def _init():
        o_ref[...] = jnp.zeros_like(o_ref)

    tile = p * steps_per_part + s
    start = tile * samples_per_tile

    # Skip tiles that exist only because of padding.
    @pl.when(start < n_valid)
    def _compute():
        x = logits_ref[...].astype(jnp.float32)    # (C, 8, TN): packed samples
        t = targets_ref[...]                       # (8, TN) int32
        tn = x.shape[-1]

        # --- fused per-sample cross entropy, everything on full (8, TN) vregs
        m = jnp.max(x, axis=0)                                    # (8, TN)
        shifted = x - m[None, :, :]
        sum_exp = jnp.sum(jnp.exp(shifted), axis=0)               # (8, TN)
        cls = lax.broadcasted_iota(jnp.int32, x.shape, 0)
        tgt_logit = jnp.sum(jnp.where(cls == t[None, :, :], shifted, 0.0),
                            axis=0)                               # (8, TN)
        l_i = jnp.log(sum_exp) - tgt_logit                        # (8, TN)

        # --- sigma via Lambert W:  y = 0.5*max(-2/e, (l_i - tau)/lam)
        #     sigma = exp(-W0(y)) == W0(y)/y      (guard y ~ 0 -> sigma = 1)
        y = 0.5 * jnp.maximum(-2.0 / _E, (l_i - tau) * inv_lam)
        w = _lambertw_w0(y, n_iters=n_iters, approx_recip=True)  # log(sigma)=-w
        small = jnp.abs(y) < 1e-6
        y_safe = jnp.where(small, 1.0, y)
        sigma = jnp.where(small, 1.0, w * pl.reciprocal(y_safe, approx=True))

        # --- SuperLoss (sample_weights == 1 since class_weights is None)
        loss = (l_i - tau) * sigma + lam * (w * w)        # lam * log(sigma)^2

        # Mask samples added by padding.  Sample index = start + sub*TN + lane.
        idx = (start
               + lax.broadcasted_iota(jnp.int32, loss.shape, 0) * tn
               + lax.broadcasted_iota(jnp.int32, loss.shape, 1))
        loss = jnp.where(idx < n_valid, loss, 0.0)

        # Lane-aligned partial sums: (8, TN) -> (8, 128) via TN/128-1 VPU adds
        # (no cross-lane reduce in the hot loop); accumulate into the resident
        # lane-dense output block.
        acc = loss[:, 0:128]
        for cix in range(1, tn // 128):
            acc = acc + loss[:, cix * 128:(cix + 1) * 128]
        o_ref[...] += acc


def super_loss(logits, targets, *, C=10, lam=1.0, batch_size=128,
               block_samples=8192, num_partials=1, n_iters=3):
    """SuperLoss forward (class_weights=None). logits: (N, C), targets: (N,).

    num_partials=1 is right for single-TensorCore chips (v5e/v6e); pass 2 on
    v7x to shard the outer 'parallel' axis across its two TensorCores.
    """
    assert block_samples % (8 * 128) == 0, "block_samples must be k*8*128"
    n, c = logits.shape
    tau = math.log(C)
    cdiv = lambda a, b: -(-a // b)

    # --- tile geometry: each tile packs 8*TN samples as an (8, TN) slab ---
    tn = block_samples // 8
    tn = min(tn, max(128, cdiv(cdiv(n, 8), 128) * 128))    # shrink for small N
    # Cap so 2x double-buffered (C,8,TN)+targets inputs stay inside ~24 MiB
    # (comfortable on every generation, including v7x's 64 MiB VMEM).
    vmem_cap = 24 * 1024 * 1024
    tn_cap = max(128, (vmem_cap // (2 * 2 * 4 * 8 * (c + 1))) // 128 * 128)
    tn = min(tn, tn_cap)
    spt = 8 * tn                                           # samples per tile

    n_tiles_real = cdiv(n, spt)
    num_partials = max(1, min(num_partials, n_tiles_real))
    steps_per_part = cdiv(n_tiles_real, num_partials)
    n_tiles = num_partials * steps_per_part
    n_pad = n_tiles * spt

    # Layout change: (N, C) -> (C, n_tiles, 8, TN).  transpose+pad+reshape
    # compile to a single XLA copy fusion (one read + one write of logits).
    logits_t = jnp.transpose(logits.astype(jnp.float32))          # (C, N)
    targets_i = targets.astype(jnp.int32)
    if n_pad != n:
        logits_t = jnp.pad(logits_t, ((0, 0), (0, n_pad - n)))
        targets_i = jnp.pad(targets_i, (0, n_pad - n))
    logits_packed = logits_t.reshape(c, n_tiles, 8, tn)
    targets_packed = targets_i.reshape(n_tiles, 8, tn)

    kernel = functools.partial(
        _superloss_kernel, tau=tau, inv_lam=1.0 / float(lam), lam=float(lam),
        n_valid=n, samples_per_tile=spt, steps_per_part=steps_per_part,
        n_iters=n_iters)

    cost = pl.CostEstimate(
        flops=int(n_pad * (6 * c + 20 * n_iters + 60)),
        transcendentals=int(n_pad * (c + n_iters + 5)),
        bytes_accessed=int(n_pad * 4 * (c + 1) + num_partials * 8 * 128 * 4))

    partials = pl.pallas_call(
        kernel,
        out_shape=jax.ShapeDtypeStruct((num_partials, 8, 128), jnp.float32),
        grid=(num_partials, steps_per_part),
        in_specs=[
            pl.BlockSpec((c, None, 8, tn),
                         lambda p, s: (0, p * steps_per_part + s, 0, 0)),
            pl.BlockSpec((None, 8, tn),
                         lambda p, s: (p * steps_per_part + s, 0, 0)),
        ],
        out_specs=pl.BlockSpec((None, 8, 128), lambda p, s: (p, 0, 0)),
        compiler_params=pltpu.CompilerParams(
            dimension_semantics=("parallel", "arbitrary")),
        cost_estimate=cost,
    )(logits_packed, targets_packed)

    # Every element of the output holds a genuine partial sum (padded work is
    # masked/skipped), so a full sum is the total loss sum.
    return jnp.sum(partials) * (1.0 / float(batch_size))


def _super_loss_ref(logits, targets, *, C, lam, batch_size):
    """Pure-JAX reference (exact divides, more Lambert-W iterations)."""
    logits = logits.astype(jnp.float32)
    tau = math.log(C)
    logp = jax.nn.log_softmax(logits, axis=-1)
    l_i = -jnp.take_along_axis(logp, targets[:, None].astype(jnp.int32),
                               axis=-1)[:, 0]
    y = 0.5 * jnp.maximum(-2.0 / _E, (l_i - tau) / lam)
    w = _lambertw_w0(y, n_iters=8, approx_recip=False)
    sigma = jnp.exp(-w)
    loss = (l_i - tau) * sigma + lam * jnp.log(sigma) ** 2
    return jnp.sum(loss) / batch_size


if __name__ == "__main__":
    key = jax.random.PRNGKey(0)
    k1, k2, k3, k4 = jax.random.split(key, 4)

    # Small, module-consistent shapes.
    N, C = 8, 10
    logits = jax.random.normal(k1, (N, C), dtype=jnp.float32)
    targets = jax.random.randint(k2, (N,), 0, C, dtype=jnp.int32)
    loss = super_loss(logits, targets, C=C, lam=1.0, batch_size=N)
    loss = jax.block_until_ready(loss)
    assert jnp.isfinite(loss), f"non-finite loss: {loss}"
    ref = _super_loss_ref(logits, targets, C=C, lam=1.0, batch_size=N)
    assert jnp.allclose(loss, ref, rtol=1e-2, atol=1e-3), (float(loss), float(ref))

    # Multi-tile case: exercises the grid, padding mask, padded-tile skip and
    # the two-partial ("parallel") accumulation path.
    N2 = 2500
    logits2 = 3.0 * jax.random.normal(k3, (N2, C), dtype=jnp.float32)
    targets2 = jax.random.randint(k4, (N2,), 0, C, dtype=jnp.int32)
    loss2 = super_loss(logits2, targets2, C=C, lam=1.0, batch_size=128,
                       block_samples=1024, num_partials=2)
    loss2 = jax.block_until_ready(loss2)
    assert jnp.isfinite(loss2), f"non-finite loss: {loss2}"
    ref2 = _super_loss_ref(logits2, targets2, C=C, lam=1.0, batch_size=128)
    assert jnp.allclose(loss2, ref2, rtol=1e-2, atol=1e-3), (float(loss2), float(ref2))

    print("KERNEL_OK")
</pallas_src>

<mosaic_0001>
module attributes {stable_mosaic.version = 11 : i64} {
  func.func @_superloss_kernel(%arg0: i32, %arg1: i32, %arg2: memref<10x1x8x128xf32, #tpu.memory_space<vmem>>, %arg3: memref<1x8x128xi32, #tpu.memory_space<vmem>>, %arg4: memref<1x8x128xf32, #tpu.memory_space<vmem>>) attributes {dimension_semantics = [#tpu.dimension_semantics<parallel>, #tpu.dimension_semantics<arbitrary>], iteration_bounds = array<i64: 1, 1>, scalar_prefetch = 0 : i64, scratch_operands = 0 : i64, tpu.core_type = #tpu.core_type<tc>, window_params = [{transform_indices = @transform_0, window_bounds = array<i64: 10, 1, 8, 128>}, {transform_indices = @transform_1, window_bounds = array<i64: 1, 8, 128>}, {transform_indices = @transform_2, window_bounds = array<i64: 1, 8, 128>}]} {
    %c0_i32 = arith.constant 0 : i32
    %0 = arith.cmpi eq, %arg1, %c0_i32 : i32
    %1 = arith.extui %0 : i1 to i32
    %c0_i32_0 = arith.constant 0 : i32
    %2 = arith.cmpi ne, %1, %c0_i32_0 : i32
    scf.if %2 {
      %cst = arith.constant 0.000000e+00 : f32
      %9 = vector.broadcast %cst : f32 to vector<8x128xf32>
      %c0 = arith.constant 0 : index
      %c0_2 = arith.constant 0 : index
      %c0_3 = arith.constant 0 : index
      %10 = vector.load %arg4[%c0, %c0_2, %c0_3] : memref<1x8x128xf32, #tpu.memory_space<vmem>>, vector<1x8x128xf32>
      %11 = vector.shape_cast %10 : vector<1x8x128xf32> to vector<8x128xf32>
      %12 = vector.shape_cast %9 : vector<8x128xf32> to vector<1x8x128xf32>
      tpu.vector_store %arg4[%c0, %c0_2, %c0_3], %12 {strides = array<i32>} : memref<1x8x128xf32, #tpu.memory_space<vmem>>, vector<1x8x128xf32>,
    } else {
    }
    %c1_i32 = arith.constant 1 : i32
    %3 = arith.muli %arg0, %c1_i32 : i32
    %4 = arith.addi %3, %arg1 : i32
    %c1024_i32 = arith.constant 1024 : i32
    %5 = arith.muli %4, %c1024_i32 : i32
    %c8_i32 = arith.constant 8 : i32
    %6 = arith.cmpi slt, %5, %c8_i32 : i32
    %7 = arith.extui %6 : i1 to i32
    %c0_i32_1 = arith.constant 0 : i32
    %8 = arith.cmpi ne, %7, %c0_i32_1 : i32
    scf.if %8 {
      %c0 = arith.constant 0 : index
      %c0_2 = arith.constant 0 : index
      %c0_3 = arith.constant 0 : index
      %c0_4 = arith.constant 0 : index
      %9 = vector.load %arg2[%c0, %c0_2, %c0_3, %c0_4] : memref<10x1x8x128xf32, #tpu.memory_space<vmem>>, vector<10x1x8x128xf32>
      %10 = vector.shape_cast %9 : vector<10x1x8x128xf32> to vector<10x8x128xf32>
      %c0_5 = arith.constant 0 : index
      %c0_6 = arith.constant 0 : index
      %c0_7 = arith.constant 0 : index
      %11 = vector.load %arg3[%c0_5, %c0_6, %c0_7] : memref<1x8x128xi32, #tpu.memory_space<vmem>>, vector<1x8x128xi32>
      %12 = vector.shape_cast %11 : vector<1x8x128xi32> to vector<8x128xi32>
      %cst = arith.constant dense<0xFF800000> : vector<8x128xf32>
      %13 = vector.multi_reduction <maximumf>, %10, %cst [0] : vector<10x8x128xf32> to vector<8x128xf32>
      %14 = vector.shape_cast %13 : vector<8x128xf32> to vector<1x8x128xf32>
      %15 = vector.broadcast %14 : vector<1x8x128xf32> to vector<10x8x128xf32>
      %16 = arith.subf %10, %15 : vector<10x8x128xf32>
      %17 = math.exp %16 : vector<10x8x128xf32>
      %cst_8 = arith.constant dense<0.000000e+00> : vector<8x128xf32>
      %18 = vector.multi_reduction <add>, %17, %cst_8 [0] : vector<10x8x128xf32> to vector<8x128xf32>
      %19 = tpu.iota {dimensions = array<i32: 0>} : vector<10x8x128xi32>
      %20 = vector.shape_cast %12 : vector<8x128xi32> to vector<1x8x128xi32>
      %21 = vector.broadcast %20 : vector<1x8x128xi32> to vector<10x8x128xi32>
      %22 = arith.cmpi eq, %19, %21 : vector<10x8x128xi32>
      %cst_9 = arith.constant 0.000000e+00 : f32
      %23 = vector.broadcast %cst_9 : f32 to vector<10x8x128xf32>
      %24 = arith.select %22, %16, %23 : vector<10x8x128xi1>, vector<10x8x128xf32>
      %cst_10 = arith.constant dense<0.000000e+00> : vector<8x128xf32>
      %25 = vector.multi_reduction <add>, %24, %cst_10 [0] : vector<10x8x128xf32> to vector<8x128xf32>
      %26 = math.log %18 : vector<8x128xf32>
      %27 = arith.subf %26, %25 : vector<8x128xf32>
      %cst_11 = arith.constant 2.30258512 : f32
      %28 = vector.broadcast %cst_11 : f32 to vector<8x128xf32>
      %29 = arith.subf %27, %28 : vector<8x128xf32>
      %cst_12 = arith.constant 1.000000e+00 : f32
      %30 = vector.broadcast %cst_12 : f32 to vector<8x128xf32>
      %31 = arith.mulf %29, %30 : vector<8x128xf32>
      %cst_13 = arith.constant -0.735758901 : f32
      %32 = vector.broadcast %cst_13 : f32 to vector<8x128xf32>
      %33 = arith.maximumf %32, %31 : vector<8x128xf32>
      %cst_14 = arith.constant 5.000000e-01 : f32
      %34 = vector.broadcast %cst_14 : f32 to vector<8x128xf32>
      %35 = arith.mulf %34, %33 : vector<8x128xf32>
      %cst_15 = arith.constant 2.71828175 : f32
      %36 = vector.broadcast %cst_15 : f32 to vector<8x128xf32>
      %37 = arith.mulf %36, %35 : vector<8x128xf32>
      %cst_16 = arith.constant 1.000000e+00 : f32
      %38 = vector.broadcast %cst_16 : f32 to vector<8x128xf32>
      %39 = arith.addf %37, %38 : vector<8x128xf32>
      %cst_17 = arith.constant 2.000000e+00 : f32
      %40 = vector.broadcast %cst_17 : f32 to vector<8x128xf32>
      %41 = arith.mulf %40, %39 : vector<8x128xf32>
      %cst_18 = arith.constant 0.000000e+00 : f32
      %42 = vector.broadcast %cst_18 : f32 to vector<8x128xf32>
      %43 = arith.maximumf %41, %42 : vector<8x128xf32>
      %44 = math.sqrt %43 : vector<8x128xf32>
      %cst_19 = arith.constant -1.000000e+00 : f32
      %45 = vector.broadcast %cst_19 : f32 to vector<8x128xf32>
      %46 = arith.addf %45, %44 : vector<8x128xf32>
      %cst_20 = arith.constant 0.333333343 : f32
      %47 = vector.broadcast %cst_20 : f32 to vector<8x128xf32>
      %48 = arith.mulf %43, %47 : vector<8x128xf32>
      %49 = arith.subf %46, %48 : vector<8x128xf32>
      %cst_21 = arith.constant 0.152777776 : f32
      %50 = vector.broadcast %cst_21 : f32 to vector<8x128xf32>
      %51 = arith.mulf %50, %44 : vector<8x128xf32>
      %52 = arith.mulf %51, %43 : vector<8x128xf32>
      %53 = arith.addf %49, %52 : vector<8x128xf32>
      %cst_22 = arith.constant 1.500000e+00 : f32
      %54 = vector.broadcast %cst_22 : f32 to vector<8x128xf32>
      %55 = arith.mulf %54, %35 : vector<8x128xf32>
      %cst_23 = arith.constant -1.000000e+00 : f32
      %56 = vector.broadcast %cst_23 : f32 to vector<8x128xf32>
      %57 = arith.addf %56, %55 : vector<8x128xf32>
      %58 = arith.mulf %35, %57 : vector<8x128xf32>
      %cst_24 = arith.constant 1.000000e+00 : f32
      %59 = vector.broadcast %cst_24 : f32 to vector<8x128xf32>
      %60 = arith.addf %59, %58 : vector<8x128xf32>
      %61 = arith.mulf %35, %60 : vector<8x128xf32>
      %cst_25 = arith.constant 1.000000e+00 : f32
      %62 = vector.broadcast %cst_25 : f32 to vector<8x128xf32>
      %63 = arith.addf %62, %35 : vector<8x128xf32>
      %64 = math.log %63 : vector<8x128xf32>
      %cst_26 = arith.constant 1.000000e+00 : f32
      %65 = vector.broadcast %cst_26 : f32 to vector<8x128xf32>
      %66 = arith.addf %65, %64 : vector<8x128xf32>
      %67 = math.log %66 : vector<8x128xf32>
      %cst_27 = arith.constant 2.000000e+00 : f32
      %68 = vector.broadcast %cst_27 : f32 to vector<8x128xf32>
      %69 = arith.addf %68, %64 : vector<8x128xf32>
      %70 = tpu.reciprocal %69 {approx = true} : vector<8x128xf32> -> vector<8x128xf32>
      %71 = arith.mulf %67, %70 : vector<8x128xf32>
      %cst_28 = arith.constant 1.000000e+00 : f32
      %72 = vector.broadcast %cst_28 : f32 to vector<8x128xf32>
      %73 = arith.subf %72, %71 : vector<8x128xf32>
      %74 = arith.mulf %64, %73 : vector<8x128xf32>
      %cst_29 = arith.constant -2.500000e-01 : f32
      %75 = vector.broadcast %cst_29 : f32 to vector<8x128xf32>
      %76 = arith.cmpf olt, %35, %75 : vector<8x128xf32>
      %cst_30 = arith.constant 2.500000e-01 : f32
      %77 = vector.broadcast %cst_30 : f32 to vector<8x128xf32>
      %78 = arith.cmpf olt, %35, %77 : vector<8x128xf32>
      %79 = arith.select %78, %61, %74 : vector<8x128xi1>, vector<8x128xf32>
      %80 = arith.select %76, %53, %79 : vector<8x128xi1>, vector<8x128xf32>
      %81 = math.exp %80 : vector<8x128xf32>
      %82 = arith.mulf %80, %81 : vector<8x128xf32>
      %83 = arith.subf %82, %35 : vector<8x128xf32>
      %cst_31 = arith.constant 1.000000e+00 : f32
      %84 = vector.broadcast %cst_31 : f32 to vector<8x128xf32>
      %85 = arith.addf %80, %84 : vector<8x128xf32>
      %cst_32 = arith.constant 2.000000e+00 : f32
      %86 = vector.broadcast %cst_32 : f32 to vector<8x128xf32>
      %87 = arith.mulf %86, %85 : vector<8x128xf32>
      %88 = arith.mulf %83, %87 : vector<8x128xf32>
      %89 = arith.mulf %81, %85 : vector<8x128xf32>
      %90 = arith.mulf %89, %87 : vector<8x128xf32>
      %cst_33 = arith.constant 2.000000e+00 : f32
      %91 = vector.broadcast %cst_33 : f32 to vector<8x128xf32>
      %92 = arith.addf %80, %91 : vector<8x128xf32>
      %93 = arith.mulf %92, %83 : vector<8x128xf32>
      %94 = arith.subf %90, %93 : vector<8x128xf32>
      %cst_34 = arith.constant 0.000000e+00 : f32
      %95 = vector.broadcast %cst_34 : f32 to vector<8x128xf32>
      %96 = arith.cmpf oeq, %94, %95 : vector<8x128xf32>
      %cst_35 = arith.constant 1.000000e+00 : f32
      %97 = vector.broadcast %cst_35 : f32 to vector<8x128xf32>
      %98 = arith.select %96, %97, %94 : vector<8x128xi1>, vector<8x128xf32>
      %99 = tpu.reciprocal %98 {approx = true} : vector<8x128xf32> -> vector<8x128xf32>
      %100 = arith.mulf %88, %99 : vector<8x128xf32>
      %101 = arith.subf %80, %100 : vector<8x128xf32>
      %102 = math.exp %101 : vector<8x128xf32>
      %103 = arith.mulf %101, %102 : vector<8x128xf32>
      %104 = arith.subf %103, %35 : vector<8x128xf32>
      %cst_36 = arith.constant 1.000000e+00 : f32
      %105 = vector.broadcast %cst_36 : f32 to vector<8x128xf32>
      %106 = arith.addf %101, %105 : vector<8x128xf32>
      %cst_37 = arith.constant 2.000000e+00 : f32
      %107 = vector.broadcast %cst_37 : f32 to vector<8x128xf32>
      %108 = arith.mulf %107, %106 : vector<8x128xf32>
      %109 = arith.mulf %104, %108 : vector<8x128xf32>
      %110 = arith.mulf %102, %106 : vector<8x128xf32>
      %111 = arith.mulf %110, %108 : vector<8x128xf32>
      %cst_38 = arith.constant 2.000000e+00 : f32
      %112 = vector.broadcast %cst_38 : f32 to vector<8x128xf32>
      %113 = arith.addf %101, %112 : vector<8x128xf32>
      %114 = arith.mulf %113, %104 : vector<8x128xf32>
      %115 = arith.subf %111, %114 : vector<8x128xf32>
      %cst_39 = arith.constant 0.000000e+00 : f32
      %116 = vector.broadcast %cst_39 : f32 to vector<8x128xf32>
      %117 = arith.cmpf oeq, %115, %116 : vector<8x128xf32>
      %cst_40 = arith.constant 1.000000e+00 : f32
      %118 = vector.broadcast %cst_40 : f32 to vector<8x128xf32>
      %119 = arith.select %117, %118, %115 : vector<8x128xi1>, vector<8x128xf32>
      %120 = tpu.reciprocal %119 {approx = true} : vector<8x128xf32> -> vector<8x128xf32>
      %121 = arith.mulf %109, %120 : vector<8x128xf32>
      %122 = arith.subf %101, %121 : vector<8x128xf32>
      %123 = math.exp %122 : vector<8x128xf32>
      %124 = arith.mulf %122, %123 : vector<8x128xf32>
      %125 = arith.subf %124, %35 : vector<8x128xf32>
      %cst_41 = arith.constant 1.000000e+00 : f32
      %126 = vector.broadcast %cst_41 : f32 to vector<8x128xf32>
      %127 = arith.addf %122, %126 : vector<8x128xf32>
      %cst_42 = arith.constant 2.000000e+00 : f32
      %128 = vector.broadcast %cst_42 : f32 to vector<8x128xf32>
      %129 = arith.mulf %128, %127 : vector<8x128xf32>
      %130 = arith.mulf %125, %129 : vector<8x128xf32>
      %131 = arith.mulf %123, %127 : vector<8x128xf32>
      %132 = arith.mulf %131, %129 : vector<8x128xf32>
      %cst_43 = arith.constant 2.000000e+00 : f32
      %133 = vector.broadcast %cst_43 : f32 to vector<8x128xf32>
      %134 = arith.addf %122, %133 : vector<8x128xf32>
      %135 = arith.mulf %134, %125 : vector<8x128xf32>
      %136 = arith.subf %132, %135 : vector<8x128xf32>
      %cst_44 = arith.constant 0.000000e+00 : f32
      %137 = vector.broadcast %cst_44 : f32 to vector<8x128xf32>
      %138 = arith.cmpf oeq, %136, %137 : vector<8x128xf32>
      %cst_45 = arith.constant 1.000000e+00 : f32
      %139 = vector.broadcast %cst_45 : f32 to vector<8x128xf32>
      %140 = arith.select %138, %139, %136 : vector<8x128xi1>, vector<8x128xf32>
      %141 = tpu.reciprocal %140 {approx = true} : vector<8x128xf32> -> vector<8x128xf32>
      %142 = arith.mulf %130, %141 : vector<8x128xf32>
      %143 = arith.subf %122, %142 : vector<8x128xf32>
      %cst_46 = arith.constant -1.000000e+00 : f32
      %144 = vector.broadcast %cst_46 : f32 to vector<8x128xf32>
      %145 = arith.maximumf %143, %144 : vector<8x128xf32>
      %146 = math.absf %35 : vector<8x128xf32>
      %cst_47 = arith.constant 9.99999997E-7 : f32
      %147 = vector.broadcast %cst_47 : f32 to vector<8x128xf32>
      %148 = arith.cmpf olt, %146, %147 : vector<8x128xf32>
      %cst_48 = arith.constant 1.000000e+00 : f32
      %149 = vector.broadcast %cst_48 : f32 to vector<8x128xf32>
      %150 = arith.select %148, %149, %35 : vector<8x128xi1>, vector<8x128xf32>
      %151 = tpu.reciprocal %150 {approx = true} : vector<8x128xf32> -> vector<8x128xf32>
      %152 = arith.mulf %145, %151 : vector<8x128xf32>
      %cst_49 = arith.constant 1.000000e+00 : f32
      %153 = vector.broadcast %cst_49 : f32 to vector<8x128xf32>
      %154 = arith.select %148, %153, %152 : vector<8x128xi1>, vector<8x128xf32>
      %cst_50 = arith.constant 2.30258512 : f32
      %155 = vector.broadcast %cst_50 : f32 to vector<8x128xf32>
      %156 = arith.subf %27, %155 : vector<8x128xf32>
      %157 = arith.mulf %156, %154 : vector<8x128xf32>
      %158 = arith.mulf %145, %145 : vector<8x128xf32>
      %cst_51 = arith.constant 1.000000e+00 : f32
      %159 = vector.broadcast %cst_51 : f32 to vector<8x128xf32>
      %160 = arith.mulf %159, %158 : vector<8x128xf32>
      %161 = arith.addf %157, %160 : vector<8x128xf32>
      %162 = tpu.iota {dimensions = array<i32: 0>} : vector<8x128xi32>
      %c128_i32 = arith.constant 128 : i32
      %163 = vector.broadcast %c128_i32 : i32 to vector<8x128xi32>
      %164 = arith.muli %162, %163 : vector<8x128xi32>
      %165 = vector.broadcast %5 : i32 to vector<8x128xi32>
      %166 = arith.addi %165, %164 : vector<8x128xi32>
      %167 = tpu.iota {dimensions = array<i32: 1>} : vector<8x128xi32>
      %168 = arith.addi %166, %167 : vector<8x128xi32>
      %c8_i32_52 = arith.constant 8 : i32
      %169 = vector.broadcast %c8_i32_52 : i32 to vector<8x128xi32>
      %170 = arith.cmpi slt, %168, %169 : vector<8x128xi32>
      %cst_53 = arith.constant 0.000000e+00 : f32
      %171 = vector.broadcast %cst_53 : f32 to vector<8x128xf32>
      %172 = arith.select %170, %161, %171 : vector<8x128xi1>, vector<8x128xf32>
      %c0_54 = arith.constant 0 : index
      %c0_55 = arith.constant 0 : index
      %c0_56 = arith.constant 0 : index
      %173 = vector.load %arg4[%c0_54, %c0_55, %c0_56] : memref<1x8x128xf32, #tpu.memory_space<vmem>>, vector<1x8x128xf32>
      %174 = vector.shape_cast %173 : vector<1x8x128xf32> to vector<8x128xf32>
      %175 = arith.addf %174, %172 : vector<8x128xf32>
      %c0_57 = arith.constant 0 : index
      %c0_58 = arith.constant 0 : index
      %c0_59 = arith.constant 0 : index
      %176 = vector.load %arg4[%c0_57, %c0_58, %c0_59] : memref<1x8x128xf32, #tpu.memory_space<vmem>>, vector<1x8x128xf32>
      %177 = vector.shape_cast %176 : vector<1x8x128xf32> to vector<8x128xf32>
      %178 = vector.shape_cast %175 : vector<8x128xf32> to vector<1x8x128xf32>
      tpu.vector_store %arg4[%c0_57, %c0_58, %c0_59], %178 {strides = array<i32>} : memref<1x8x128xf32, #tpu.memory_space<vmem>>, vector<1x8x128xf32>,
    } else {
    }
    return
  }
  func.func @transform_0(%arg0: i32, %arg1: i32) -> (i32, i32, i32, i32) {
    %c1_i32 = arith.constant 1 : i32
    %0 = arith.muli %arg0, %c1_i32 : i32
    %1 = arith.addi %0, %arg1 : i32
    %c0_i32 = arith.constant 0 : i32
    %c0_i32_0 = arith.constant 0 : i32
    %c0_i32_1 = arith.constant 0 : i32
    %c0_i32_2 = arith.constant 0 : i32
    return %c0_i32, %1, %c0_i32_0, %c0_i32_1 : i32, i32, i32, i32
  }
  func.func @transform_1(%arg0: i32, %arg1: i32) -> (i32, i32, i32) {
    %c1_i32 = arith.constant 1 : i32
    %0 = arith.muli %arg0, %c1_i32 : i32
    %1 = arith.addi %0, %arg1 : i32
    %c0_i32 = arith.constant 0 : i32
    %c0_i32_0 = arith.constant 0 : i32
    %c0_i32_1 = arith.constant 0 : i32
    return %1, %c0_i32, %c0_i32_0 : i32, i32, i32
  }
  func.func @transform_2(%arg0: i32, %arg1: i32) -> (i32, i32, i32) {
    %c0_i32 = arith.constant 0 : i32
    %c0_i32_0 = arith.constant 0 : i32
    %c0_i32_1 = arith.constant 0 : i32
    return %arg0, %c0_i32, %c0_i32_0 : i32, i32, i32
  }
}

</mosaic_0001>

<bundles_post_ra>
// kernel: tpu_custom_call.1
= control target key start
LH: loop header
LB: loop body
LE: loop exit
PB: predicated region body
PF: predicated region fallthrough
CT: control target
= control target key end

     0   :  { %7 = vsyncpa [#allocation3], 0  ;;  %s485_s0 = inlined_call_operand.hbm [shape: f32[10,1,8,128], index: 0, kind: input, shape index: {}]   ;;  %s486_s1 = inlined_call_operand.hbm [shape: s32[1,8,128], index: 1, kind: input, shape index: {}]   ;;  %s487_s2 = inlined_call_operand.hbm [shape: f32[1,8,128], index: 2, kind: output, shape index: {}]  }
   0x1   :  { %8 = vsyncpa [#allocation6], 0 }
   0x2   :  { %9 = vsyncpa [#allocation4], 0  ;;  %s17_s11 = sshll.u32 %s485_s0, 4  ;;  %s418_s12 = smov [#allocation2]   ;;  %s18_s11 = int_to_ptr.hbm [resolvable:$true] %s17_s11 }
   0x3   :  { %s19_s13 = sshll.u32 %s418_s12, 4  ;;  %s34_s16 = sshll.u32 %s486_s1, 4  ;;  %s20_s13 = int_to_ptr.vmem [resolvable:$true] %s19_s13  ;;  %s35_s16 = int_to_ptr.hbm [resolvable:$true] %s34_s16 }
   0x4   :  { %s419_s17 = smov 128   ;;  %s420_s18 = smov 8  }
   0x5   :  { %25 = dma.hbm_to_vmem [thread:$0]  %s18_s11, 1280, %s20_s13, [#allocation3], %s419_s17, %s419_s17, %s420_s18  }
   0x6   :  { %s421_s19 = smov [#allocation5]  }
   0x7   :  { %s36_s20 = sshll.u32 %s421_s19, 4  ;;  %s37_s20 = int_to_ptr.vmem [resolvable:$true] %s36_s20 }
   0x8   :  { %39 = dma.hbm_to_vmem [thread:$0]  %s35_s16, 128, %s37_s20, [#allocation6]  }
   0x9   :  { %412 = dma.done.wait [#allocation3], 1280  }
   0xa   :  { %413 = vsyncadd [#allocation3], 4294966016 }
   0xb   :  { %414 = dma.done.wait [#allocation6], 128  }
   0xc   :  { %415 = vsyncadd [#allocation6], 4294967168  ;;  %v61_v0 = vld [vmem:[#allocation2] sm:$0xff]  ;;  %v62_v1 = vld [vmem:[#allocation2 + $0x8] sm:$0xff]  ;;  %s422_s0 = smov [#allocation7]   ;;  %s278_s23 = sshll.u32 %s487_s2, 4  ;;  %s279_s23 = int_to_ptr.hbm [resolvable:$true] %s278_s23 }
   0xd   :  { %v63_v2 = vld [vmem:[#allocation2 + $0x10] sm:$0xff]  ;;  %v64_v3 = vld [vmem:[#allocation2 + $0x18] sm:$0xff]  ;;  %v65_v4 = vld [vmem:[#allocation2 + $0x20] sm:$0xff]  ;;  %s276_s1 = sshll.u32 %s422_s0, 4  ;;  %s277_s1 = int_to_ptr.vmem [resolvable:$true] %s276_s1 }
   0xe   :  { %v66_v5 = vld [vmem:[#allocation2 + $0x28] sm:$0xff]  ;;  %v67_v6 = vld [vmem:[#allocation2 + $0x30] sm:$0xff]  ;;  %v68_v7 = vld [vmem:[#allocation2 + $0x38] sm:$0xff]  ;;  %v72_v9 = vmax.f32 %v61_v0, %v65_v4 }
   0xf   :  { %v69_v8 = vld [vmem:[#allocation2 + $0x40] sm:$0xff]  ;;  %v73_v10 = vmax.f32 %v62_v1, %v66_v5  ;;  %v70_v11 = vld [vmem:[#allocation2 + $0x48] sm:$0xff]  ;;  %v74_v12 = vmax.f32 %v63_v2, %v67_v6  ;;  %v75_v13 = vmax.f32 %v64_v3, %v68_v7  ;;  %v444_v19 = vld [vmem:[#allocation5] sm:$0xff] }
  0x10   :  { %v76_v14 = vmax.f32 %v72_v9, %v69_v8  ;;  %vm120_vm0 = vcmp.eq.s32.totalorder %v444_v19, 0  ;;  %vm121_vm1 = vcmp.eq.s32.totalorder %v444_v19, 1  ;;  %vm122_vm2 = vcmp.eq.s32.totalorder %v444_v19, 2 }
  0x11   :  { %v77_v15 = vmax.f32 %v73_v10, %v70_v11  ;;  %v79_v16 = vmax.f32 %v74_v12, %v75_v13  ;;  %vm123_vm3 = vcmp.eq.s32.totalorder %v444_v19, 3  ;;  %vm124_vm4 = vcmp.eq.s32.totalorder %v444_v19, 4 }
  0x12   :  { %vm125_vm5 = vcmp.eq.s32.totalorder %v444_v19, 5  ;;  %vm126_vm6 = vcmp.eq.s32.totalorder %v444_v19, 6  ;;  %vm127_vm7 = vcmp.eq.s32.totalorder %v444_v19, 7  ;;  %vm128_vm8 = vcmp.eq.s32.totalorder %v444_v19, 8 }
  0x13   :  { %v78_v17 = vmax.f32 %v76_v14, %v77_v15  ;;  %vm129_vm9 = vcmp.eq.s32.totalorder %v444_v19, 9 }
  0x15   :  { %v80_v18 = vmax.f32 %v78_v17, %v79_v16 }
  0x17   :  { %v81_v20 = vsub.f32 %v61_v0, %v80_v18  ;;  %v82_v21 = vsub.f32 %v62_v1, %v80_v18  ;;  %v83_v22 = vsub.f32 %v63_v2, %v80_v18  ;;  %v84_v23 = vsub.f32 %v64_v3, %v80_v18 }
  0x18   :  { %v85_v24 = vsub.f32 %v65_v4, %v80_v18  ;;  %v86_v27 = vsub.f32 %v66_v5, %v80_v18  ;;  %v87_v30 = vsub.f32 %v67_v6, %v80_v18  ;;  %v88_v34 = vsub.f32 %v68_v7, %v80_v18 }
  0x19   :  { %v91_v25 = vmul.f32 1.442695, %v81_v20  ;;  %v93_v26 = vmul.f32 1.442695, %v82_v21  ;;  %v95_v28 = vmul.f32 1.442695, %v83_v22  ;;  %v89_v37 = vsub.f32 %v69_v8, %v80_v18 }
  0x1a   :  { %v97_v29 = vmul.f32 1.442695, %v84_v23  ;;  %v99_v31 = vmul.f32 1.442695, %v85_v24  ;;  %v130_v32 = vsel %vm120_vm0, %v81_v20, 0.0  ;;  %v131_v33 = vsel %vm121_vm1, %v82_v21, 0.0 }
  0x1b   :  { %296 = vpow2.f32 %v91_v25  ;;  %v101_v35 = vmul.f32 1.442695, %v86_v27  ;;  %v132_v36 = vsel %vm122_vm2, %v83_v22, 0.0  ;;  %v103_v38 = vmul.f32 1.442695, %v87_v30 }
  0x1c   :  { %298 = vpow2.f32 %v93_v26  ;;  %v140_v39 = vadd.f32 %v131_v33, %v130_v32  ;;  %v133_v41 = vsel %vm123_vm3, %v84_v23, 0.0  ;;  %v90_v43 = vsub.f32 %v70_v11, %v80_v18 }
  0x1d   :  { %300 = vpow2.f32 %v95_v28  ;;  %v105_v44 = vmul.f32 1.442695, %v88_v34  ;;  %v134_v48 = vsel %vm124_vm4, %v85_v24, 0.0  ;;  %v107_v50 = vmul.f32 1.442695, %v89_v37 }
  0x1e   :  { %302 = vpow2.f32 %v97_v29  ;;  %v141_v45 = vadd.f32 %v140_v39, %v132_v36  ;;  %v109_v54 = vmul.f32 1.442695, %v90_v43  ;;  %v135_v57 = vsel %vm125_vm5, %v86_v27, 0.0 }
  0x1f   :  { %304 = vpow2.f32 %v99_v31  ;;  %v136_v63 = vsel %vm126_vm6, %v87_v30, 0.0  ;;  %v137_v5 = vsel %vm127_vm7, %v88_v34, 0.0  ;;  %v138_v10 = vsel %vm128_vm8, %v89_v37, 0.0 }
  0x20   :  { %306 = vpow2.f32 %v101_v35  ;;  %v142_v51 = vadd.f32 %v141_v45, %v133_v41  ;;  %v139_v12 = vsel %vm129_vm9, %v90_v43, 0.0 }
  0x21   :  { %v297_v40 = vpop.eup %296  ;;  %308 = vpow2.f32 %v103_v38 }
  0x22   :  { %v299_v42 = vpop.eup %298  ;;  %310 = vpow2.f32 %v105_v44  ;;  %v143_v55 = vadd.f32 %v142_v51, %v134_v48 }
  0x23   :  { %v301_v46 = vpop.eup %300  ;;  %v111_v47 = vadd.f32 %v299_v42, %v297_v40  ;;  %312 = vpow2.f32 %v107_v50 }
  0x24   :  { %v303_v49 = vpop.eup %302  ;;  %314 = vpow2.f32 %v109_v54  ;;  %v144_v61 = vadd.f32 %v143_v55, %v135_v57 }
  0x25   :  { %v112_v52 = vadd.f32 %v301_v46, %v111_v47  ;;  %v305_v53 = vpop.eup %304 }
  0x26   :  { %v307_v58 = vpop.eup %306  ;;  %v145_v3 = vadd.f32 %v144_v61, %v136_v63 }
  0x27   :  { %v113_v56 = vadd.f32 %v303_v49, %v112_v52  ;;  %v309_v60 = vpop.eup %308 }
  0x28   :  { %v311_v0 = vpop.eup %310  ;;  %v146_v8 = vadd.f32 %v145_v3, %v137_v5 }
  0x29   :  { %v114_v59 = vadd.f32 %v305_v53, %v113_v56  ;;  %v313_v2 = vpop.eup %312 }
  0x2a   :  { %v315_v6 = vpop.eup %314  ;;  %v147_v11 = vadd.f32 %v146_v8, %v138_v10 }
  0x2b   :  { %v115_v62 = vadd.f32 %v307_v58, %v114_v59 }
  0x2c   :  { %v148_v13 = vadd.f32 %v147_v11, %v139_v12 }
  0x2d   :  { %v116_v1 = vadd.f32 %v309_v60, %v115_v62 }
  0x2f   :  { %v117_v4 = vadd.f32 %v311_v0, %v116_v1 }
  0x31   :  { %v118_v7 = vadd.f32 %v313_v2, %v117_v4 }
  0x33   :  { %v119_v9 = vadd.f32 %v315_v6, %v118_v7 }
  0x35   :  { %316 = vlog2.f32 %v119_v9 }
  0x3b   :  { %v317_v14 = vpop.eup %316 }
  0x3c   :  { %v150_v15 = vmul.f32 0.6931472, %v317_v14 }
  0x3e   :  { %v151_v16 = vsub.f32 %v150_v15, %v148_v13 }
  0x40   :  { %v456_v17 = vadd.f32 -2.3025851, %v151_v16 }
  0x42   :  { %v153_v18 = vmax.f32 %v456_v17, -0.7357589 }
  0x44   :  { %v459_v20 = vmul.f32 0.5, %v153_v18 }
  0x46   :  { %v155_v21 = vmul.f32 2.7182817, %v459_v20  ;;  %v182_v22 = vadd.f32 1.0, %v459_v20  ;;  %v177_v29 = vmul.f32 1.5, %v459_v20  ;;  %vm194_vm12 = vcmp.lt.f32.partialorder %v459_v20, 0.25 }
  0x47   :  { %vm193_vm13 = vcmp.lt.f32.partialorder %v459_v20, -0.25 }
  0x48   :  { %v156_v23 = vadd.f32 1.0, %v155_v21  ;;  %318 = vlog2.f32 %v182_v22  ;;  %v178_v32 = vadd.f32 -1.0, %v177_v29 }
  0x4a   :  { %v157_v19 = vmul.f32 2.0, %v156_v23  ;;  %v179_v37 = vmul.f32 %v178_v32, %v459_v20 }
  0x4c   :  { %v158_v24 = vmax.f32 %v157_v19, 0.0  ;;  %v180_v43 = vadd.f32 1.0, %v179_v37 }
  0x4e   :  { %v319_v25 = vpop.eup %318  ;;  %320 = vrsqrt.f32 %v158_v24  ;;  %vm166_vm10 = vcmp.eq.f32.partialorder %v158_v24, inf  ;;  %v169_v42 = vand.u32 2147483648, %v158_v24  ;;  %vm168_vm11 = vcmp.eq.f32.partialorder %v158_v24, 0.0 }
  0x4f   :  { %v184_v26 = vmul.f32 0.6931472, %v319_v25  ;;  %v172_v47 = vmul.f32 0.33333334, %v158_v24  ;;  %v181_v49 = vmul.f32 %v180_v43, %v459_v20  ;;  %v258_v43 = vlaneseq }
  0x51   :  { %v185_v27 = vadd.f32 1.0, %v184_v26  ;;  %v188_v28 = vadd.f32 2.0, %v184_v26 }
  0x53   :  { %322 = vlog2.f32 %v185_v27 }
  0x54   :  { %v321_v30 = vpop.eup %320  ;;  %324 = vrcp.f32 %v188_v28 }
  0x55   :  { %v160_v31 = vmul.f32 %v321_v30, %v158_v24 }
  0x57   :  { %v161_v33 = vmul.f32 %v321_v30, %v160_v31 }
  0x59   :  { %v323_v34 = vpop.eup %322  ;;  %v162_v35 = vmul.f32 0.5, %v161_v33 }
  0x5a   :  { %v325_v36 = vpop.eup %324  ;;  %v187_v38 = vmul.f32 0.6931472, %v323_v34 }
  0x5b   :  { %v163_v39 = vsub.f32 1.5, %v162_v35 }
  0x5c   :  { %v190_v40 = vmul.f32 %v325_v36, %v187_v38  ;;  %v249_v38 = vand.u32 2147483647, %v459_v20 }
  0x5d   :  { %v164_v41 = vmul.f32 %v321_v30, %v163_v39 }
  0x5e   :  { %v191_v44 = vsub.f32 1.0, %v190_v40  ;;  %vm472_vm1 = vcmp.lt.f32.partialorder %v249_v38, 1e-06 }
  0x5f   :  { %v165_v45 = vmul.f32 %v164_v41, %v158_v24 }
  0x60   :  { %v192_v50 = vmul.f32 %v191_v44, %v184_v26 }
  0x61   :  { %v167_v46 = vsel %vm166_vm10, %v158_v24, %v165_v45  ;;  %v259_v45 = vshrl.u32 %v258_v43, 7 }
  0x62   :  { %v170_v48 = vsel %vm168_vm11, %v169_v42, %v167_v46  ;;  %v195_v55 = vsel %vm194_vm12, %v181_v49, %v192_v50  ;;  %v251_v42 = vsel %vm472_vm1, 1.0, %v459_v20  ;;  %v264_v50 = vand.u32 127, %v258_v43 }
  0x63   :  { %v171_v51 = vadd.f32 -1.0, %v170_v48  ;;  %v174_v52 = vmul.f32 0.15277778, %v170_v48  ;;  %v260_v49 = vmul.u32 128, %v259_v45 }
  0x65   :  { %v173_v53 = vsub.f32 %v171_v51, %v172_v47  ;;  %v175_v54 = vmul.f32 %v174_v52, %v158_v24 }
  0x67   :  { %v176_v56 = vadd.f32 %v175_v54, %v173_v53  ;;  %v265_v54 = vadd.s32 %v264_v50, %v260_v49 }
  0x69   :  { %v196_v57 = vsel %vm193_vm13, %v176_v56, %v195_v55  ;;  %vm266_vm2 = vcmp.lt.s32.totalorder %v265_v54, 8 }
  0x6a   :  { %v197_v58 = vmul.f32 1.442695, %v196_v57  ;;  %v201_v59 = vadd.f32 1.0, %v196_v57  ;;  %v206_v0 = vadd.f32 2.0, %v196_v57 }
  0x6c   :  { %326 = vpow2.f32 %v197_v58  ;;  %v202_v60 = vmul.f32 2.0, %v201_v59 }
  0x72   :  { %v327_v61 = vpop.eup %326 }
  0x73   :  { %v199_v62 = vmul.f32 %v327_v61, %v196_v57  ;;  %v204_v63 = vmul.f32 %v327_v61, %v201_v59 }
  0x75   :  { %v200_v1 = vsub.f32 %v199_v62, %v459_v20  ;;  %v205_v2 = vmul.f32 %v204_v63, %v202_v60 }
  0x77   :  { %v207_v3 = vmul.f32 %v206_v0, %v200_v1  ;;  %v203_v6 = vmul.f32 %v202_v60, %v200_v1 }
  0x79   :  { %v208_v4 = vsub.f32 %v205_v2, %v207_v3 }
  0x7b   :  { %vm209_vm14 = vcmp.eq.f32.partialorder %v208_v4, 0.0 }
  0x7c   :  { %v210_v5 = vsel %vm209_vm14, 1.0, %v208_v4 }
  0x7d   :  { %328 = vrcp.f32 %v210_v5 }
  0x83   :  { %v329_v7 = vpop.eup %328 }
  0x84   :  { %v212_v8 = vmul.f32 %v329_v7, %v203_v6 }
  0x86   :  { %v213_v9 = vsub.f32 %v196_v57, %v212_v8 }
  0x88   :  { %v214_v10 = vmul.f32 1.442695, %v213_v9  ;;  %v218_v11 = vadd.f32 1.0, %v213_v9  ;;  %v223_v16 = vadd.f32 2.0, %v213_v9 }
  0x8a   :  { %330 = vpow2.f32 %v214_v10  ;;  %v219_v12 = vmul.f32 2.0, %v218_v11 }
  0x90   :  { %v331_v13 = vpop.eup %330 }
  0x91   :  { %v216_v14 = vmul.f32 %v331_v13, %v213_v9  ;;  %v221_v15 = vmul.f32 %v331_v13, %v218_v11 }
  0x93   :  { %v217_v18 = vsub.f32 %v216_v14, %v459_v20  ;;  %v222_v21 = vmul.f32 %v221_v15, %v219_v12 }
  0x95   :  { %v224_v22 = vmul.f32 %v223_v16, %v217_v18  ;;  %v220_v24 = vmul.f32 %v219_v12, %v217_v18 }
  0x97   :  { %v225_v23 = vsub.f32 %v222_v21, %v224_v22 }
  0x99   :  { %vm226_vm15 = vcmp.eq.f32.partialorder %v225_v23, 0.0 }
  0x9a   :  { %v227_v19 = vsel %vm226_vm15, 1.0, %v225_v23 }
  0x9b   :  { %332 = vrcp.f32 %v227_v19 }
  0xa1   :  { %v333_v25 = vpop.eup %332 }
  0xa2   :  { %v229_v26 = vmul.f32 %v333_v25, %v220_v24 }
  0xa4   :  { %v230_v27 = vsub.f32 %v213_v9, %v229_v26 }
  0xa6   :  { %v231_v28 = vmul.f32 1.442695, %v230_v27  ;;  %v235_v29 = vadd.f32 1.0, %v230_v27  ;;  %v240_v34 = vadd.f32 2.0, %v230_v27 }
  0xa8   :  { %334 = vpow2.f32 %v231_v28  ;;  %v236_v30 = vmul.f32 2.0, %v235_v29 }
  0xae   :  { %v335_v31 = vpop.eup %334 }
  0xaf   :  { %v233_v32 = vmul.f32 %v335_v31, %v230_v27  ;;  %v238_v33 = vmul.f32 %v335_v31, %v235_v29 }
  0xb1   :  { %v234_v35 = vsub.f32 %v233_v32, %v459_v20  ;;  %v239_v36 = vmul.f32 %v238_v33, %v236_v30 }
  0xb3   :  { %v241_v37 = vmul.f32 %v240_v34, %v234_v35  ;;  %v237_v44 = vmul.f32 %v236_v30, %v234_v35 }
  0xb5   :  { %v242_v39 = vsub.f32 %v239_v36, %v241_v37 }
  0xb7   :  { %vm243_vm0 = vcmp.eq.f32.partialorder %v242_v39, 0.0 }
  0xb8   :  { %v244_v41 = vsel %vm243_vm0, 1.0, %v242_v39 }
  0xb9   :  { %336 = vrcp.f32 %v244_v41 }
  0xba   :  { %338 = vrcp.f32 %v251_v42 }
  0xbf   :  { %v337_v46 = vpop.eup %336 }
  0xc0   :  { %v246_v47 = vmul.f32 %v337_v46, %v237_v44  ;;  %v339_v51 = vpop.eup %338 }
  0xc2   :  { %v247_v48 = vsub.f32 %v230_v27, %v246_v47 }
  0xc4   :  { %v248_v52 = vmax.f32 %v247_v48, -1.0 }
  0xc6   :  { %v253_v53 = vmul.f32 %v339_v51, %v248_v52  ;;  %v256_v55 = vmul.f32 %v248_v52, %v248_v52 }
  0xc8   :  { %v254_v56 = vsel %vm472_vm1, 1.0, %v253_v53 }
  0xc9   :  { %v255_v57 = vmul.f32 %v456_v17, %v254_v56 }
  0xcb   :  { %v257_v20 = vadd.f32 %v256_v55, %v255_v57 }
  0xcd   :  { %v267_v58 = vsel %vm266_vm2, %v257_v20, 0.0 }
  0xce   :  { %270 = vst [vmem:[#allocation7] sm:$0xff] %v267_v58 }
  0xcf   :  { %281 = dma.vmem_to_hbm [thread:$0]  %s277_s1, 128, %s279_s23, [#allocation4]  }
  0xd0   :  { %416 = dma.done.wait [#allocation4], 128  }
  0xd1   :  { %417 = vsyncadd [#allocation4], 4294967168 }
  0xd2   :  { %286 = vsyncpa [#allocation3], 1 }
  0xd3   :  { %287 = vsyncpa [#allocation6], 1 }
  0xd4   :  { %288 = vsyncpa [#allocation4], 1 }

</bundles_post_ra>
